<compile_context>
chip_gen: v7x
topology: tpu7x:2x2x1
jax: 0.10.0
libtpu: 0.0.40
codegen_flags: <defaults>
</compile_context>

<pallas_src>
import functools

import jax
import jax.numpy as jnp
from jax.experimental import pallas as pl
from jax.experimental.pallas import tpu as pltpu


def _round_up(x, m):
    return (x + m - 1) // m * m


def _cdiv(a, b):
    return (a + b - 1) // b


def simple_shader_kernel(g_ref, b_ref, p2f_ref, out_ref, *, bg_color):
    """One tile of (bs, L) pixels, planar (channel-leading) layout.

    g_ref   : (9, bs, L) f32  gathered top-face vertex colors, row = vertex*3 + channel
    b_ref   : (3, bs, L) f32  barycentric coords of the top (k=0) face
    p2f_ref : (bs, L)    i32  pix_to_face[..., 0]; < 0 => background pixel
    out_ref : (4, bs, L) f32  RGBA
    """
    g = g_ref[...]                       # (9, bs, L)
    b = b_ref[...]                       # (3, bs, L)
    is_bg = p2f_ref[...] < 0             # (bs, L)

    b0, b1, b2 = b[0], b[1], b[2]        # full (bs, L) planes -> dense VPU ops
    # ---- sample_textures (barycentric interp) + hard_rgb_blend --------------
    for c in range(3):                   # static unroll over RGB channels
        tex_c = b0 * g[c] + b1 * g[3 + c] + b2 * g[6 + c]          # (bs, L)
        out_ref[c] = jnp.where(is_bg, jnp.float32(bg_color[c]), tex_c)
    # pytorch3d's hard_rgb_blend sets alpha = 1 for every pixel.
    out_ref[3] = jnp.ones(p2f_ref.shape, jnp.float32)


def simple_shader(pix_to_face, bary_coords, faces_verts_rgb,
                  background_color=(1.0, 1.0, 1.0),
                  lanes=512, block_rows=128):
    """Fragments(pix_to_face, bary_coords) + TexturesVertex(faces_verts_rgb) -> RGBA image."""
    N, H, W, K = pix_to_face.shape
    F = faces_verts_rgb.shape[0]
    P = N * H * W

    # ---- wrapper-side gather of the top (k=0) face only ----------------------
    # One XLA gather against the pre-transposed color table gives the planar
    # (9, P) slab directly (no standalone narrow transpose of the gathered data).
    p2f = pix_to_face[..., 0].reshape(P).astype(jnp.int32)                 # (P,)
    safe_idx = jnp.clip(p2f, 0, F - 1)                                     # bg pixels overwritten in-kernel
    frgb_t = faces_verts_rgb.astype(jnp.float32).reshape(F, 9).T           # (9, F), tiny
    gathered = jnp.take(frgb_t, safe_idx, axis=1)                          # (9, P)
    bary = bary_coords[..., 0, :].reshape(P, 3).astype(jnp.float32).T      # (3, P)
    # TODO(synk): for meshes with only a handful of faces an in-kernel bf16
    # one-hot MXU gather (face-chunked) can skip this wrapper gather pass.

    # ---- 2D pixel re-layout: (rows, lanes) with full (8, 128) vregs ---------
    lanes = int(min(lanes, _round_up(P, 128)))
    lanes = _round_up(lanes, 128)
    S = _cdiv(P, lanes)
    bs = int(block_rows)
    if S >= 16:
        # keep >= 2 grid steps so the "parallel" axis can shard over v7x's 2 TCs
        bs = min(bs, _round_up(_cdiv(S, 2), 8))
    bs = max(8, _round_up(min(bs, _round_up(S, 8)), 8))
    S_pad = _round_up(S, bs)
    P_pad = S_pad * lanes

    if P_pad != P:
        pad = P_pad - P
        p2f = jnp.pad(p2f, (0, pad), constant_values=-1)      # padding = background
        gathered = jnp.pad(gathered, ((0, 0), (0, pad)))
        bary = jnp.pad(bary, ((0, 0), (0, pad)))

    gathered = gathered.reshape(9, S_pad, lanes)
    bary = bary.reshape(3, S_pad, lanes)
    p2f = p2f.reshape(S_pad, lanes)

    kernel = functools.partial(
        simple_shader_kernel,
        bg_color=tuple(float(c) for c in background_color))

    out = pl.pallas_call(
        kernel,
        out_shape=jax.ShapeDtypeStruct((4, S_pad, lanes), jnp.float32),
        grid_spec=pltpu.PrefetchScalarGridSpec(
            num_scalar_prefetch=0,
            grid=(S_pad // bs,),
            in_specs=[
                pl.BlockSpec((9, bs, lanes), lambda i: (0, i, 0)),
                pl.BlockSpec((3, bs, lanes), lambda i: (0, i, 0)),
                pl.BlockSpec((bs, lanes), lambda i: (i, 0)),
            ],
            out_specs=pl.BlockSpec((4, bs, lanes), lambda i: (0, i, 0)),
        ),
        compiler_params=pltpu.CompilerParams(
            dimension_semantics=("parallel",),
            vmem_limit_bytes=64 * 1024 * 1024),
    )(gathered, bary, p2f)

    # TODO(synk): downstream consumers that accept a planar (4, P) buffer could
    # skip this final NHWC transpose pass (the kernel itself is memcpy-class).
    return out.reshape(4, P_pad)[:, :P].T.reshape(N, H, W, 4)


def _reference(pix_to_face, bary_coords, faces_verts_rgb, bg):
    """Plain-JAX reference of sample_textures + hard_rgb_blend (pytorch3d semantics)."""
    idx = jnp.clip(pix_to_face, 0, faces_verts_rgb.shape[0] - 1)
    g = faces_verts_rgb[idx]                                         # (N,H,W,K,3,3)
    tex = jnp.einsum('nhwkv,nhwkvc->nhwkc', bary_coords, g)
    is_bg = (pix_to_face[..., 0] < 0)[..., None]
    rgb = jnp.where(is_bg, jnp.asarray(bg, jnp.float32), tex[..., 0, :])
    alpha = jnp.ones(rgb.shape[:-1] + (1,), jnp.float32)             # alpha = 1 everywhere
    return jnp.concatenate([rgb, alpha], axis=-1)


if __name__ == "__main__":
    # Small synthetic "rasterization" output (Fragments) + per-face vertex colors.
    N, H, W, K, F = 2, 32, 32, 2, 64
    key = jax.random.PRNGKey(0)
    k1, k2, k3 = jax.random.split(key, 3)

    # pix_to_face: ints in [-1, F); -1 marks background pixels.
    pix_to_face = jax.random.randint(k1, (N, H, W, K), minval=-1, maxval=F,
                                     dtype=jnp.int32)
    # barycentric coords: positive, normalized to sum to 1.
    raw = jax.random.uniform(k2, (N, H, W, K, 3), dtype=jnp.float32) + 0.1
    bary_coords = raw / jnp.sum(raw, axis=-1, keepdims=True)
    # deterministic synthetic texture: per-face per-vertex RGB in [0, 1].
    faces_verts_rgb = jax.random.uniform(k3, (F, 3, 3), dtype=jnp.float32)

    bg = (1.0, 1.0, 1.0)  # BlendParams() default background_color
    # lanes=128 / block_rows=8 just to exercise a multi-step grid on this tiny
    # demo; the defaults (lanes=512, block_rows=128 -> 64K pixels per tile) are
    # the performance setting for real image sizes.
    images = simple_shader(pix_to_face, bary_coords, faces_verts_rgb,
                           background_color=bg, lanes=128, block_rows=8)
    images = jax.block_until_ready(images)

    expected = _reference(pix_to_face, bary_coords, faces_verts_rgb, bg)
    assert images.shape == (N, H, W, 4)
    assert jnp.allclose(images, expected, atol=1e-5, rtol=1e-5)

    print("KERNEL_OK")
</pallas_src>

<mosaic_0001>
module attributes {stable_mosaic.version = 11 : i64} {
  func.func @simple_shader_kernel(%arg0: i32, %arg1: memref<9x8x128xf32, #tpu.memory_space<vmem>>, %arg2: memref<3x8x128xf32, #tpu.memory_space<vmem>>, %arg3: memref<8x128xi32, #tpu.memory_space<vmem>>, %arg4: memref<4x8x128xf32, #tpu.memory_space<vmem>>) attributes {dimension_semantics = [#tpu.dimension_semantics<parallel>], iteration_bounds = array<i64: 2>, scalar_prefetch = 0 : i64, scratch_operands = 0 : i64, tpu.core_type = #tpu.core_type<tc>, window_params = [{transform_indices = @transform_0, window_bounds = array<i64: 9, 8, 128>}, {transform_indices = @transform_1, window_bounds = array<i64: 3, 8, 128>}, {transform_indices = @transform_2, window_bounds = array<i64: 8, 128>}, {transform_indices = @transform_3, window_bounds = array<i64: 4, 8, 128>}]} {
    %c0 = arith.constant 0 : index
    %c0_0 = arith.constant 0 : index
    %c0_1 = arith.constant 0 : index
    %0 = vector.load %arg1[%c0, %c0_0, %c0_1] : memref<9x8x128xf32, #tpu.memory_space<vmem>>, vector<9x8x128xf32>
    %c0_2 = arith.constant 0 : index
    %c0_3 = arith.constant 0 : index
    %c0_4 = arith.constant 0 : index
    %1 = vector.load %arg2[%c0_2, %c0_3, %c0_4] : memref<3x8x128xf32, #tpu.memory_space<vmem>>, vector<3x8x128xf32>
    %c0_5 = arith.constant 0 : index
    %c0_6 = arith.constant 0 : index
    %2 = vector.load %arg3[%c0_5, %c0_6] : memref<8x128xi32, #tpu.memory_space<vmem>>, vector<8x128xi32>
    %c0_i32 = arith.constant 0 : i32
    %3 = vector.broadcast %c0_i32 : i32 to vector<8x128xi32>
    %4 = arith.cmpi slt, %2, %3 : vector<8x128xi32>
    %5 = vector.extract_strided_slice %1 {offsets = [0, 0, 0], sizes = [1, 8, 128], strides = [1, 1, 1]} : vector<3x8x128xf32> to vector<1x8x128xf32>
    %6 = vector.shape_cast %5 : vector<1x8x128xf32> to vector<8x128xf32>
    %7 = vector.extract_strided_slice %1 {offsets = [1, 0, 0], sizes = [1, 8, 128], strides = [1, 1, 1]} : vector<3x8x128xf32> to vector<1x8x128xf32>
    %8 = vector.shape_cast %7 : vector<1x8x128xf32> to vector<8x128xf32>
    %9 = vector.extract_strided_slice %1 {offsets = [2, 0, 0], sizes = [1, 8, 128], strides = [1, 1, 1]} : vector<3x8x128xf32> to vector<1x8x128xf32>
    %10 = vector.shape_cast %9 : vector<1x8x128xf32> to vector<8x128xf32>
    %11 = vector.extract_strided_slice %0 {offsets = [0, 0, 0], sizes = [1, 8, 128], strides = [1, 1, 1]} : vector<9x8x128xf32> to vector<1x8x128xf32>
    %12 = vector.shape_cast %11 : vector<1x8x128xf32> to vector<8x128xf32>
    %13 = arith.mulf %6, %12 : vector<8x128xf32>
    %14 = vector.extract_strided_slice %0 {offsets = [3, 0, 0], sizes = [1, 8, 128], strides = [1, 1, 1]} : vector<9x8x128xf32> to vector<1x8x128xf32>
    %15 = vector.shape_cast %14 : vector<1x8x128xf32> to vector<8x128xf32>
    %16 = arith.mulf %8, %15 : vector<8x128xf32>
    %17 = arith.addf %13, %16 : vector<8x128xf32>
    %18 = vector.extract_strided_slice %0 {offsets = [6, 0, 0], sizes = [1, 8, 128], strides = [1, 1, 1]} : vector<9x8x128xf32> to vector<1x8x128xf32>
    %19 = vector.shape_cast %18 : vector<1x8x128xf32> to vector<8x128xf32>
    %20 = arith.mulf %10, %19 : vector<8x128xf32>
    %21 = arith.addf %17, %20 : vector<8x128xf32>
    %cst = arith.constant 1.000000e+00 : f32
    %22 = vector.broadcast %cst : f32 to vector<8x128xf32>
    %23 = arith.select %4, %22, %21 : vector<8x128xi1>, vector<8x128xf32>
    %c0_7 = arith.constant 0 : index
    %c0_8 = arith.constant 0 : index
    %c0_9 = arith.constant 0 : index
    %24 = vector.load %arg4[%c0_7, %c0_8, %c0_9] : memref<4x8x128xf32, #tpu.memory_space<vmem>>, vector<1x8x128xf32>
    %25 = vector.shape_cast %24 : vector<1x8x128xf32> to vector<8x128xf32>
    %26 = vector.shape_cast %23 : vector<8x128xf32> to vector<1x8x128xf32>
    tpu.vector_store %arg4[%c0_7, %c0_8, %c0_9], %26 {strides = array<i32>} : memref<4x8x128xf32, #tpu.memory_space<vmem>>, vector<1x8x128xf32>,
    %27 = vector.extract_strided_slice %0 {offsets = [1, 0, 0], sizes = [1, 8, 128], strides = [1, 1, 1]} : vector<9x8x128xf32> to vector<1x8x128xf32>
    %28 = vector.shape_cast %27 : vector<1x8x128xf32> to vector<8x128xf32>
    %29 = arith.mulf %6, %28 : vector<8x128xf32>
    %30 = vector.extract_strided_slice %0 {offsets = [4, 0, 0], sizes = [1, 8, 128], strides = [1, 1, 1]} : vector<9x8x128xf32> to vector<1x8x128xf32>
    %31 = vector.shape_cast %30 : vector<1x8x128xf32> to vector<8x128xf32>
    %32 = arith.mulf %8, %31 : vector<8x128xf32>
    %33 = arith.addf %29, %32 : vector<8x128xf32>
    %34 = vector.extract_strided_slice %0 {offsets = [7, 0, 0], sizes = [1, 8, 128], strides = [1, 1, 1]} : vector<9x8x128xf32> to vector<1x8x128xf32>
    %35 = vector.shape_cast %34 : vector<1x8x128xf32> to vector<8x128xf32>
    %36 = arith.mulf %10, %35 : vector<8x128xf32>
    %37 = arith.addf %33, %36 : vector<8x128xf32>
    %cst_10 = arith.constant 1.000000e+00 : f32
    %38 = vector.broadcast %cst_10 : f32 to vector<8x128xf32>
    %39 = arith.select %4, %38, %37 : vector<8x128xi1>, vector<8x128xf32>
    %c1 = arith.constant 1 : index
    %c0_11 = arith.constant 0 : index
    %c0_12 = arith.constant 0 : index
    %40 = vector.load %arg4[%c1, %c0_11, %c0_12] : memref<4x8x128xf32, #tpu.memory_space<vmem>>, vector<1x8x128xf32>
    %41 = vector.shape_cast %40 : vector<1x8x128xf32> to vector<8x128xf32>
    %42 = vector.shape_cast %39 : vector<8x128xf32> to vector<1x8x128xf32>
    tpu.vector_store %arg4[%c1, %c0_11, %c0_12], %42 {strides = array<i32>} : memref<4x8x128xf32, #tpu.memory_space<vmem>>, vector<1x8x128xf32>,
    %43 = vector.extract_strided_slice %0 {offsets = [2, 0, 0], sizes = [1, 8, 128], strides = [1, 1, 1]} : vector<9x8x128xf32> to vector<1x8x128xf32>
    %44 = vector.shape_cast %43 : vector<1x8x128xf32> to vector<8x128xf32>
    %45 = arith.mulf %6, %44 : vector<8x128xf32>
    %46 = vector.extract_strided_slice %0 {offsets = [5, 0, 0], sizes = [1, 8, 128], strides = [1, 1, 1]} : vector<9x8x128xf32> to vector<1x8x128xf32>
    %47 = vector.shape_cast %46 : vector<1x8x128xf32> to vector<8x128xf32>
    %48 = arith.mulf %8, %47 : vector<8x128xf32>
    %49 = arith.addf %45, %48 : vector<8x128xf32>
    %50 = vector.extract_strided_slice %0 {offsets = [8, 0, 0], sizes = [1, 8, 128], strides = [1, 1, 1]} : vector<9x8x128xf32> to vector<1x8x128xf32>
    %51 = vector.shape_cast %50 : vector<1x8x128xf32> to vector<8x128xf32>
    %52 = arith.mulf %10, %51 : vector<8x128xf32>
    %53 = arith.addf %49, %52 : vector<8x128xf32>
    %cst_13 = arith.constant 1.000000e+00 : f32
    %54 = vector.broadcast %cst_13 : f32 to vector<8x128xf32>
    %55 = arith.select %4, %54, %53 : vector<8x128xi1>, vector<8x128xf32>
    %c2 = arith.constant 2 : index
    %c0_14 = arith.constant 0 : index
    %c0_15 = arith.constant 0 : index
    %56 = vector.load %arg4[%c2, %c0_14, %c0_15] : memref<4x8x128xf32, #tpu.memory_space<vmem>>, vector<1x8x128xf32>
    %57 = vector.shape_cast %56 : vector<1x8x128xf32> to vector<8x128xf32>
    %58 = vector.shape_cast %55 : vector<8x128xf32> to vector<1x8x128xf32>
    tpu.vector_store %arg4[%c2, %c0_14, %c0_15], %58 {strides = array<i32>} : memref<4x8x128xf32, #tpu.memory_space<vmem>>, vector<1x8x128xf32>,
    %cst_16 = arith.constant 1.000000e+00 : f32
    %59 = vector.broadcast %cst_16 : f32 to vector<8x128xf32>
    %c3 = arith.constant 3 : index
    %c0_17 = arith.constant 0 : index
    %c0_18 = arith.constant 0 : index
    %60 = vector.load %arg4[%c3, %c0_17, %c0_18] : memref<4x8x128xf32, #tpu.memory_space<vmem>>, vector<1x8x128xf32>
    %61 = vector.shape_cast %60 : vector<1x8x128xf32> to vector<8x128xf32>
    %62 = vector.shape_cast %59 : vector<8x128xf32> to vector<1x8x128xf32>
    tpu.vector_store %arg4[%c3, %c0_17, %c0_18], %62 {strides = array<i32>} : memref<4x8x128xf32, #tpu.memory_space<vmem>>, vector<1x8x128xf32>,
    return
  }
  func.func @transform_0(%arg0: i32) -> (i32, i32, i32) {
    %c0_i32 = arith.constant 0 : i32
    %c0_i32_0 = arith.constant 0 : i32
    %c0_i32_1 = arith.constant 0 : i32
    return %c0_i32, %arg0, %c0_i32_0 : i32, i32, i32
  }
  func.func @transform_1(%arg0: i32) -> (i32, i32, i32) {
    %c0_i32 = arith.constant 0 : i32
    %c0_i32_0 = arith.constant 0 : i32
    %c0_i32_1 = arith.constant 0 : i32
    return %c0_i32, %arg0, %c0_i32_0 : i32, i32, i32
  }
  func.func @transform_2(%arg0: i32) -> (i32, i32) {
    %c0_i32 = arith.constant 0 : i32
    %c0_i32_0 = arith.constant 0 : i32
    return %arg0, %c0_i32 : i32, i32
  }
  func.func @transform_3(%arg0: i32) -> (i32, i32, i32) {
    %c0_i32 = arith.constant 0 : i32
    %c0_i32_0 = arith.constant 0 : i32
    %c0_i32_1 = arith.constant 0 : i32
    return %c0_i32, %arg0, %c0_i32_0 : i32, i32, i32
  }
}

</mosaic_0001>

<bundles_post_ra>
// kernel: tpu_custom_call.1
= control target key start
LH: loop header
LB: loop body
LE: loop exit
PB: predicated region body
PF: predicated region fallthrough
CT: control target
= control target key end

     0   :  { %s973_s0 = inlined_call_operand.hbm [shape: f32[9,16,128], index: 0, kind: input, shape index: {}]   ;;  %s974_s1 = inlined_call_operand.hbm [shape: f32[3,16,128], index: 1, kind: input, shape index: {}]   ;;  %s975_s2 = inlined_call_operand.hbm [shape: s32[16,128], index: 2, kind: input, shape index: {}]   ;;  %s976_s3 = inlined_call_operand.hbm [shape: f32[4,16,128], index: 3, kind: output, shape index: {}]  }
   0x1   :  { %984 = sst [smem:[#allocation16_spill]] %s974_s1 }
   0x2   :  { %8 = vsyncpa [#allocation3], 0 }
   0x3   :  { %10 = vsyncpa [#allocation3 + $0x1], 0 }
   0x4   :  { %11 = vsyncpa [#allocation6], 0 }
   0x5   :  { %13 = vsyncpa [#allocation6 + $0x1], 0 }
   0x6   :  { %14 = vsyncpa [#allocation4], 0 }
   0x7   :  { %16 = vsyncpa [#allocation4 + $0x1], 0  ;;  %s706_s12 = smov 0   ;;  %s708_s13 = smov 0  }
   0x8   :  { %s710_s14 = smov 0   ;;  %s712_s15 = smov 0  }
   0x9 LB: > { %985 = sst [smem:[#allocation12_spill]] %s669_s14  ;;  %s727_s16 = sadd.s32 4294967295, %s673_s15   ;;  %s673_s15 = sphi %s712_s15, %s1003_s15   ;;  %s669_s14 = sphi %s710_s14, %s1005_s14   ;;  %s665_s13 = sphi %s708_s13, %s1007_s13   ;;  %s661_s12 = sphi %s706_s12, %s1006_s12  }
   0xa   : > { %986 = sst [smem:[#allocation13_spill]] %s673_s15  ;;  %s429_s17 = sadd.s32 4294967294, %s673_s15  }
   0xb   : > { %s731_s18 = sadd.s32 1, %s673_s15   ;;  %s29_s19 = sadd.s32 1, %s669_s14 }
   0xc   : > { %987 = sst [smem:[#allocation14_spill]] %s731_s18  ;;  %s26_s20 = ssub.s32 %s673_s15, %s731_s18 }
   0xd   : > { %p36_p0 = scmp.ne.s32.totalorder %s669_s14, %s665_s13  ;;  %p27_p1 = scmp.eq.s32.totalorder %s26_s20, 0 }
   0xe   : > { %p37_p2 = scmp.eq.s32.totalorder %s673_s15, 0  ;;  %p42_p3 = scmp.ne.s32.totalorder %s665_s13, %s661_s12 }
   0xf   : > { %p43_p4 = scmp.eq.s32.totalorder %s727_s16, 0  ;;  %p118_p7 = scmp.eq.s32.totalorder %s727_s16, 1 }
  0x10   : > { %s743_s21 = scalar_select %p27_p1, %s669_s14, %s29_s19  }
  0x11   : > { %p38_p5 = por %p37_p2, %p36_p0  ;;  %p745_p6 = por %p43_p4, %p42_p3 }
  0x12   : > { %988 = sst [smem:[#allocation15_spill]] %s743_s21  ;;  %p124_p8 = scmp.eq.s32.totalorder %s429_s17, 1 }
  0x13   : > { %s989_s22 = scalar_select %p745_p6, 1, 0 }
  0x14   : > { %p472_p10 = scmp.lt.s32.totalorder %s673_s15, 2  ;;  %p752_p11 = por %p118_p7, %p36_p0 }
  0x15   : > { %p756_p12 = por %p124_p8, %p42_p3  ;;  %s761_s25 = sand.u32 1, %s669_s14  }
  0x16   : > { %s990_s23 = scalar_select %p752_p11, 1, 0 }
  0x17   : > { %s991_s24 = scalar_select %p756_p12, 1, 0 }
  0x18   : > { %s764_s26 = sshll.u32 %s673_s15, 7  ;;  %p766_p13 = pnand %p472_p10, %p38_p5 }
  0x19   : > { %s164_s28 = sand.u32 1, %s673_s15   ;;  %s447_s29 = smul.u32 24, %s761_s25 }
  0x1a   : > { %s993_s1 = sld [smem:[#allocation16_spill]]  ;;  %p436_p0 = scmp.ge.s32.totalorder %s673_s15, 1 }
  0x1b   : > { %p200_p1 = scmp.lt.s32.totalorder %s673_s15, 3  ;;  %s168_s6 = scalar_lea.vmem [#allocation5], %s447_s29 }
  0x1c   : > { %s174_s7 = sshll.u32 %s168_s6, 4  ;;  %s786_s9 = scalar_lea.sflag [#allocation6], %s164_s28  ;;  %s780_s7 = int_to_ptr.vmem [resolvable:$true] %s174_s7 }
  0x1d   : > { %p782_p2 = pnand %p436_p0, %p200_p1  ;;  %p792_p4 = pneg %p766_p13 }
  0x1f   : > { %s994_s8 = scalar_select %p782_p2, 1, 0 }
  0x20   : > { %s776_s5 = scalar_lea.hbm %s993_s1, %s764_s26  ;;  %s518_s20 = scalar_lea.hbm %s993_s1, 768 }
  0x21   : > { %s513_s10 = scalar_lea.hbm %s776_s5, 384  ;;  %p519_p8 = scmp.lt.u32.totalorder %s776_s5, %s993_s1 }
  0x22   : > { %p514_p3 = scmp.ne.s32.totalorder %s776_s5, %s513_s10  ;;  %p520_p10 = scmp.lt.u32.totalorder %s518_s20, %s513_s10 }
  0x23   : > { %p522_p1 = scmp.lt.u32.totalorder %s513_s10, %s776_s5 }
  0x24   : > { %p516_p5 = pnand %p792_p4, %p514_p3  ;;  %p521_p0 = por %p520_p10, %p519_p8 }
  0x26   : > { %p517_p7 = pneg %p516_p5  ;;  %p523_p9 = por %p522_p1, %p521_p0 }
  0x28   : > { %p524_p12 = pnand %p523_p9, %p517_p7 }
  0x2a   : > { %527 = shalt.err (!%p524_p12)
}
  0x2b   : > { %s528_s28 = scalar_lea.vmem %s780_s7, 384  ;;  %s675_s4 = smov [#allocation5]  }
  0x2c   : > { %p529_p3 = scmp.ne.s32.totalorder %s780_s7, %s528_s28  ;;  %s533_s6 = sshll.u32 %s675_s4, 4  ;;  %s534_s6 = int_to_ptr.vmem [resolvable:$false] %s533_s6 }
  0x2d   : > { %s535_s17 = scalar_lea.vmem %s534_s6, 768  ;;  %p536_p6 = scmp.lt.s32.totalorder %s780_s7, %s534_s6 }
  0x2e   : > { %p531_p5 = pnand %p529_p3, %p792_p4  ;;  %p537_p2 = scmp.lt.s32.totalorder %s535_s17, %s528_s28 }
  0x30   : > { %p532_p11 = pneg %p531_p5  ;;  %p538_p8 = por %p537_p2, %p536_p6 }
  0x32   : > { %p539_p10 = pnand %p538_p8, %p532_p11 }
  0x34   : > { %542 = shalt.err (!%p539_p10)
}
  0x35   : > { %s983_s10 = smov 256   ;;  %s677_s19 = smov 128  }
  0x36   : > { %s678_s20 = smov 8   ;;  %s446_s29 = smul.u32 72, %s761_s25 }
  0x37   : > { %464 = dma.hbm_to_vmem [thread:$0]  (!%p766_p13), %s776_s5, 384, %s780_s7, %s786_s9, %s983_s10, %s677_s19, %s678_s20  }
  0x38   : > { %s824_s4 = scalar_lea.hbm %s973_s0, %s764_s26  ;;  %s434_s6 = sshll.u32 %s761_s25, 3 }
  0x39   : > { %s831_s21 = scalar_lea.hbm %s975_s2, %s764_s26  ;;  %s148_s14 = scalar_lea.vmem [#allocation2], %s446_s29 }
  0x3a   : > { %s154_s18 = sshll.u32 %s148_s14, 4  ;;  %s188_s15 = scalar_lea.vmem [#allocation7], %s434_s6  ;;  %s833_s18 = int_to_ptr.vmem [resolvable:$true] %s154_s18 }
  0x3b   : > { %s195_s5 = sshll.u32 %s188_s15, 4  ;;  %s145_s7 = scalar_lea.sflag [#allocation3], %s761_s25  ;;  %s835_s5 = int_to_ptr.vmem [resolvable:$true] %s195_s5 }
  0x3c   : > { %s543_s30 = scalar_lea.hbm %s824_s4, 1152  ;;  %s548_s1 = scalar_lea.hbm %s973_s0, 2304 }
  0x3d   : > { %p544_p6 = scmp.ne.s32.totalorder %s824_s4, %s543_s30  ;;  %p549_p12 = scmp.lt.u32.totalorder %s824_s4, %s973_s0 }
  0x3e   : > { %p550_p2 = scmp.lt.u32.totalorder %s548_s1, %s543_s30  ;;  %p552_p0 = scmp.lt.u32.totalorder %s543_s30, %s824_s4 }
  0x3f   : > { %p546_p9 = pnand %p544_p6, %p792_p4 }
  0x40   : > { %p551_p7 = por %p550_p2, %p549_p12 }
  0x41   : > { %p547_p11 = pneg %p546_p9 }
  0x42   : > { %p553_p1 = por %p552_p0, %p551_p7 }
  0x44   : > { %p554_p3 = pnand %p553_p1, %p547_p11 }
  0x46   : > { %557 = shalt.err (!%p554_p3)
}
  0x47   : > { %s558_s14 = scalar_lea.vmem %s833_s18, 1152  ;;  %s679_s15 = smov [#allocation2]  }
  0x48   : > { %p559_p5 = scmp.ne.s32.totalorder %s833_s18, %s558_s14  ;;  %s563_s10 = sshll.u32 %s679_s15, 4  ;;  %s564_s10 = int_to_ptr.vmem [resolvable:$false] %s563_s10 }
  0x49   : > { %s565_s29 = scalar_lea.vmem %s564_s10, 2304  ;;  %p566_p6 = scmp.lt.s32.totalorder %s833_s18, %s564_s10 }
  0x4a   : > { %p561_p8 = pnand %p559_p5, %p792_p4  ;;  %p567_p9 = scmp.lt.s32.totalorder %s565_s29, %s558_s14 }
  0x4c   : > { %p562_p10 = pneg %p561_p8  ;;  %p568_p12 = por %p567_p9, %p566_p6 }
  0x4e   : > { %p569_p2 = pnand %p568_p12, %p562_p10 }
  0x50   : > { %572 = shalt.err (!%p569_p2)
}
  0x51   : > { %s996_s6 = smov 256   ;;  %s573_s30 = scalar_lea.hbm %s831_s21, 128 }
  0x52   : > { %461 = dma.hbm_to_vmem [thread:$0]  (!%p766_p13), %s824_s4, 1152, %s833_s18, %s145_s7, %s996_s6, %s677_s19, %s678_s20  }
  0x53   : > { %p574_p11 = scmp.ne.s32.totalorder %s831_s21, %s573_s30  ;;  %s578_s26 = scalar_lea.hbm %s975_s2, 256 }
  0x54   : > { %p579_p1 = scmp.lt.u32.totalorder %s831_s21, %s975_s2  ;;  %p580_p3 = scmp.lt.u32.totalorder %s578_s26, %s573_s30 }
  0x55   : > { %p576_p7 = pnand %p574_p11, %p792_p4  ;;  %p582_p8 = scmp.lt.u32.totalorder %s573_s30, %s831_s21 }
  0x56   : > { %p581_p5 = por %p580_p3, %p579_p1 }
  0x57   : > { %p577_p0 = pneg %p576_p7 }
  0x58   : > { %p583_p10 = por %p582_p8, %p581_p5 }
  0x5a   : > { %p584_p6 = pnand %p583_p10, %p577_p0 }
  0x5c   : > { %587 = shalt.err (!%p584_p6)
}
  0x5d   : > { %s588_s18 = scalar_lea.vmem %s835_s5, 128  ;;  %s680_s25 = smov [#allocation7]  }
  0x5e   : > { %p589_p9 = scmp.ne.s32.totalorder %s835_s5, %s588_s18  ;;  %s593_s19 = sshll.u32 %s680_s25, 4  ;;  %s594_s19 = int_to_ptr.vmem [resolvable:$false] %s593_s19 }
  0x5f   : > { %s595_s20 = scalar_lea.vmem %s594_s19, 256  ;;  %p596_p11 = scmp.lt.s32.totalorder %s835_s5, %s594_s19 }
  0x60   : > { %p591_p12 = pnand %p589_p9, %p792_p4  ;;  %p597_p7 = scmp.lt.s32.totalorder %s595_s20, %s588_s18 }
  0x62   : > { %p592_p2 = pneg %p591_p12  ;;  %p598_p1 = por %p597_p7, %p596_p11 }
  0x64   : > { %p599_p3 = pnand %p598_p1, %p592_p2 }
  0x66   : > { %602 = shalt.err (!%p599_p3)
}
  0x67   : > { %467 = dma.hbm_to_vmem [thread:$0]  (!%p766_p13), %s831_s21, 128, %s835_s5, %s786_s9  }
  0x68   : > { %p997_p0 = scmp.ne.s32.totalorder %s994_s8, 0 }
  0x69   : > { %s889_s11 = sand.u32 (!%p997_p0), 1, %s665_s13   ;;  %p998_p4 = scmp.ne.s32.totalorder (!%p997_p0), %s989_s22, 0 }
  0x6a   : > { %204 = sbr.rel (%p997_p0) target bundleno = 147 (0x93), region = 32  ;;  %s207_s7 = scalar_lea.sflag (!%p997_p0), [#allocation3], %s889_s11 }
  0x6b   : > { %s448_s4 = smul.u32 (!%p997_p0), 72, %s889_s11 }
  0x6d   : > { %s893_s15 = scalar_lea.vmem (!%p997_p0), [#allocation2], %s448_s4 }
  0x71   : > { %648 = dma.done.wait (%p998_p4), %s207_s7, 1152  }
  0x72   : > { %650 = vsyncadd (%p998_p4), %s207_s7, 4294966144  ;;  %s215_s21 = sand.u32 1, %s727_s16   ;;  %s449_s27 = smul.u32 24, %s889_s11 }
  0x73   : > { %s216_s8 = scalar_lea.sflag [#allocation6], %s215_s21 }
  0x74   : > { %s219_s9 = scalar_lea.vmem [#allocation5], %s449_s27 }
  0x75   : > { %652 = dma.done.wait (%p998_p4), %s216_s8, 512  }
  0x76   : > { %654 = vsyncadd (%p998_p4), %s216_s8, 4294966784  ;;  %s438_s5 = sshll.u32 %s889_s11, 5  ;;  %v681_v0 = vmov 1.0   ;;  %s437_s29 = sshll.u32 %s889_s11, 3  ;;  %v261_v1 = vld [vmem:[%s893_s15] sm:$0xff]  ;;  %v264_v2 = vld [vmem:[%s893_s15 + $0x18] sm:$0xff] }
  0x77   : > { %s906_s10 = scalar_lea.vmem [#allocation8], %s438_s5  ;;  %v267_v3 = vld [vmem:[%s893_s15 + $0x30] sm:$0xff]  ;;  %v271_v5 = vld [vmem:[%s219_s9 + $0x8] sm:$0xff]  ;;  %s228_s22 = scalar_lea.vmem [#allocation7], %s437_s29  ;;  %v265_v12 = vld [vmem:[%s893_s15 + $0x20] sm:$0xff] }
  0x78   : > { %441 = vst [vmem:[%s906_s10 + $0x18] sm:$0xff] %v681_v0  ;;  %v270_v4 = vld [vmem:[%s219_s9] sm:$0xff]  ;;  %v272_v6 = vld [vmem:[%s219_s9 + $0x10] sm:$0xff]  ;;  %v276_v9 = vmul.f32 %v271_v5, %v264_v2  ;;  %v262_v11 = vld [vmem:[%s893_s15 + $0x8] sm:$0xff]  ;;  %v283_v15 = vmul.f32 %v271_v5, %v265_v12  ;;  %s313_s6 = sshll.u32 %s906_s10, 4  ;;  %s443_s30 = sshll.u32 %s727_s16, 7  ;;  %s921_s6 = int_to_ptr.vmem [resolvable:$true] %s313_s6 }
  0x79   : > { %v273_v7 = vld [vmem:[%s228_s22] sm:$0xff]  ;;  %v275_v8 = vmul.f32 %v270_v4, %v261_v1  ;;  %v278_v10 = vmul.f32 %v272_v6, %v267_v3  ;;  %v268_v13 = vld [vmem:[%s893_s15 + $0x38] sm:$0xff]  ;;  %v282_v14 = vmul.f32 %v270_v4, %v262_v11  ;;  %v263_v16 = vld [vmem:[%s893_s15 + $0x10] sm:$0xff]  ;;  %s926_s26 = scalar_lea.hbm %s976_s3, %s443_s30  ;;  %s301_s16 = scalar_lea.sflag [#allocation4], %s889_s11 }
  0x7a   : > { %v266_v17 = vld [vmem:[%s893_s15 + $0x28] sm:$0xff]  ;;  %v285_v19 = vmul.f32 %v272_v6, %v268_v13  ;;  %v269_v20 = vld [vmem:[%s893_s15 + $0x40] sm:$0xff]  ;;  %v290_v21 = vmul.f32 %v270_v4, %v263_v16  ;;  %vm274_vm0 = vcmp.lt.s32.totalorder %v273_v7, 0  ;;  %s603_s17 = scalar_lea.vmem %s921_s6, 512  ;;  %p999_p5 = scmp.ne.s32.totalorder %s990_s23, 0 }
  0x7b   : > { %v277_v18 = vadd.f32 %v276_v9, %v275_v8  ;;  %v291_v22 = vmul.f32 %v271_v5, %v266_v17  ;;  %v284_v23 = vadd.f32 %v283_v15, %v282_v14  ;;  %v293_v24 = vmul.f32 %v272_v6, %v269_v20  ;;  %p604_p13 = scmp.ne.s32.totalorder %s921_s6, %s603_s17  ;;  %s682_s14 = smov [#allocation8]  }
  0x7c   : > { %s607_s18 = sshll.u32 %s682_s14, 4  ;;  %s608_s18 = int_to_ptr.vmem [resolvable:$false] %s607_s18 }
  0x7d   : > { %v279_v25 = vadd.f32 %v278_v10, %v277_v18  ;;  %v292_v26 = vadd.f32 %v291_v22, %v290_v21  ;;  %v286_v27 = vadd.f32 %v285_v19, %v284_v23  ;;  %p605_p8 = pnand %p604_p13, %p999_p5  ;;  %s609_s25 = scalar_lea.vmem %s608_s18, 1024 }
  0x7e   : > { %p610_p6 = scmp.lt.s32.totalorder %s921_s6, %s608_s18  ;;  %p611_p9 = scmp.lt.s32.totalorder %s609_s25, %s603_s17 }
  0x7f   : > { %v280_v28 = vsel %vm274_vm0, 1.0, %v279_v25  ;;  %v294_v29 = vadd.f32 %v293_v24, %v292_v26  ;;  %v287_v30 = vsel %vm274_vm0, 1.0, %v286_v27  ;;  %p606_p10 = pneg %p605_p8 }
  0x80   : > { %281 = vst [vmem:[%s906_s10] sm:$0xff] %v280_v28  ;;  %439 = vst [vmem:[%s906_s10 + $0x8] sm:$0xff] %v287_v30  ;;  %p612_p12 = por %p611_p9, %p610_p6 }
  0x81   : > { %v295_v31 = vsel %vm274_vm0, 1.0, %v294_v29 }
  0x82   : > { %440 = vst [vmem:[%s906_s10 + $0x10] sm:$0xff] %v295_v31  ;;  %p613_p2 = pnand %p612_p12, %p606_p10 }
  0x84   : > { %616 = shalt.err (!%p613_p2)
}
  0x85   : > { %s617_s19 = scalar_lea.hbm %s926_s26, 512  ;;  %s621_s7 = scalar_lea.hbm %s976_s3, 1024 }
  0x86   : > { %p618_p11 = scmp.ne.s32.totalorder %s926_s26, %s617_s19  ;;  %p622_p3 = scmp.lt.u32.totalorder %s926_s26, %s976_s3 }
  0x87   : > { %p623_p0 = scmp.lt.u32.totalorder %s621_s7, %s617_s19  ;;  %p625_p13 = scmp.lt.u32.totalorder %s617_s19, %s926_s26 }
  0x88   : > { %p619_p7 = pnand %p618_p11, %p999_p5 }
  0x89   : > { %p624_p4 = por %p623_p0, %p622_p3 }
  0x8a   : > { %p620_p1 = pneg %p619_p7 }
  0x8b   : > { %p626_p8 = por %p625_p13, %p624_p4 }
  0x8d   : > { %p627_p10 = pnand %p626_p8, %p620_p1 }
  0x8f   : > { %630 = shalt.err (!%p627_p10)
}
  0x90   : > { %s683_s27 = smov 128   ;;  %s684_s8 = smov 256  }
  0x91   : > { %s685_s9 = smov 8  }
  0x92   : > { %456 = dma.vmem_to_hbm [thread:$0]  (%p999_p5), %s921_s6, 512, %s926_s26, %s301_s16, %s683_s27, %s684_s8, %s685_s9  }
  0x93 PF: > { %s1000_s5 = sld [smem:[#allocation13_spill]]  ;;  %s328_s10 = sand.u32 1, %s661_s12  }
  0x94   : > { %p1001_p6 = scmp.ne.s32.totalorder %s991_s24, 0  ;;  %s329_s29 = scalar_lea.sflag [#allocation4], %s328_s10 }
  0x99   : > { %p1002_p9 = scmp.ge.s32.totalorder %s1000_s5, 2 }
  0x9b   : > { %p469_p12 = pnand %p1002_p9, %p1001_p6 }
  0x9d   : > { %656 = dma.done.wait (!%p469_p12), %s329_s29, 512  }
  0x9e   : > { %658 = vsyncadd (!%p469_p12), %s329_s29, 4294966784  ;;  %s1003_s15 = sld [smem:[#allocation14_spill]]  ;;  %s1004_s22 = sld [smem:[#allocation12_spill]] }
  0x9f   : > { %s1005_s14 = sld [smem:[#allocation15_spill]]  ;;  %s1006_s12 = smov %s665_s13 }
  0xa4   : > { %p19_p2 = scmp.ge.s32.totalorder %s1003_s15, 4   ;;  %s1007_s13 = smov %s1004_s22 }
  0xa6   :  { %21 = sbr.rel (!%p19_p2) target bundleno = 9 (0x9), region = 104 }
  0xad   :  { %334 = vsyncpa [#allocation3], 1 }
  0xae   :  { %336 = vsyncpa [#allocation3 + $0x1], 1 }
  0xaf   :  { %337 = vsyncpa [#allocation6], 1 }
  0xb0   :  { %339 = vsyncpa [#allocation6 + $0x1], 1 }
  0xb1   :  { %340 = vsyncpa [#allocation4], 1 }
  0xb2   :  { %342 = vsyncpa [#allocation4 + $0x1], 1 }

</bundles_post_ra>
